<compile_context>
chip_gen: v5e
topology: v5e:2x2
jax: 0.10.0
libtpu: 0.0.40
codegen_flags: <defaults>
</compile_context>

<pallas_src>
import functools

import jax
import jax.numpy as jnp
from jax import lax
from jax.experimental import pallas as pl
from jax.experimental.pallas import tpu as pltpu

_D = 10  # feature width fixed by the module (Linear(10, 10))


def _round_up(x, m):
    return ((x + m - 1) // m) * m


def head_mlp_kernel(xT_ref, w1_ref, b1_ref, w2_ref, b2_ref, oT_ref):
    """Fused Linear->ReLU->Linear->ReLU on one (D, TB) batch tile (transposed layout)."""
    xT = xT_ref[...].astype(jnp.float32)           # in-kernel upcast; HBM stream stays in x.dtype
    h = jnp.dot(w1_ref[...], xT,
                preferred_element_type=jnp.float32,
                precision=lax.Precision.HIGHEST)
    h = jnp.maximum(h + b1_ref[...], 0.0)          # b1 (D,1) broadcasts over the lane (batch) axis
    y = jnp.dot(w2_ref[...], h,
                preferred_element_type=jnp.float32,
                precision=lax.Precision.HIGHEST)
    y = jnp.maximum(y + b2_ref[...], 0.0)
    oT_ref[...] = y.astype(oT_ref.dtype)


def prepare_head_params(w1, b1, w2, b2):
    """One-time parameter prep, hoisted out of the per-call forward path.

    torch nn.Linear stores W as (out, in); the transposed-layout kernel computes y^T = W @ x^T,
    so that layout is used as-is. Biases become (out, 1) columns so they broadcast over the lane
    (batch) axis. Params stay f32: they are tiny and VMEM-resident, so only activation bandwidth
    matters.
    """
    return (jnp.asarray(w1, jnp.float32),
            jnp.asarray(b1, jnp.float32).reshape(-1, 1),
            jnp.asarray(w2, jnp.float32),
            jnp.asarray(b2, jnp.float32).reshape(-1, 1))


def _head_pallas_T(xT, w1, b1c, w2, b2c, block_b):
    """Core call. xT: (D, Bp), Bp a multiple of 128. Returns y^T: (D, Bp), dtype preserved."""
    D, Bp = xT.shape
    out_dtype = xT.dtype
    itemsize = jnp.dtype(out_dtype).itemsize

    # VMEM-safe ceiling (double-buffered in+out; 10 rows pad to 16 sublanes):
    # f32 @ TB=32768 or bf16 @ TB=65536 -> ~8 MiB, well under v5e's 16 MiB scoped default.
    max_tb = 32768 if itemsize >= 4 else 65536
    # Keep >=4 batch tiles when possible so the "parallel" axis shards across both v7x
    # TensorCores (negligible cost on single-TC v5e/v6e).
    tb_quarter = _round_up(pl.cdiv(Bp, 4), 128)
    TB = max(128, min(block_b, tb_quarter, max_tb))
    grid = pl.cdiv(Bp, TB)          # last tile may be ragged; Pallas masks the OOB writes

    batch_tile = lambda i: (0, i)   # streamed per grid step (double-buffered by Pallas)
    resident = lambda i: (0, 0)     # constant index: weights/biases DMA'd once, stay in VMEM

    cost = pl.CostEstimate(
        flops=2 * 2 * D * D * Bp,                                    # two (D,D)x(D,Bp) matmuls
        transcendentals=0,
        bytes_accessed=2 * Bp * D * itemsize + 2 * D * D * 4 + 2 * D * 4,
    )

    return pl.pallas_call(
        head_mlp_kernel,
        out_shape=jax.ShapeDtypeStruct((D, Bp), out_dtype),
        grid_spec=pltpu.PrefetchScalarGridSpec(
            num_scalar_prefetch=0,
            grid=(grid,),
            in_specs=[
                pl.BlockSpec((D, TB), batch_tile),   # x^T tile (lane-dense)
                pl.BlockSpec((D, D), resident),      # W1 (10,10) f32
                pl.BlockSpec((D, 1), resident),      # b1 (10,1)  f32
                pl.BlockSpec((D, D), resident),      # W2 (10,10) f32
                pl.BlockSpec((D, 1), resident),      # b2 (10,1)  f32
            ],
            out_specs=pl.BlockSpec((D, TB), batch_tile),  # y^T tile (lane-dense stores)
        ),
        compiler_params=pltpu.CompilerParams(
            dimension_semantics=("parallel",),       # batch tiles shard across TCs on v7x
        ),
        cost_estimate=cost,
    )(xT, w1, b1c, w2, b2c)


@functools.partial(jax.jit, static_argnames=("block_b",))
def head_model_forward_transposed(xT, w1, b1c, w2, b2c, *, block_b=32768):
    """HeadModel forward with activations kept in the transposed (D, B) layout.

    Zero wrapper HBM relayouts: use this when the surrounding model keeps activations as
    (features, batch). xT: (10, B) -> (10, B); dtype preserved (pass bf16 to halve HBM bytes).
    """
    _, B = xT.shape
    Bp = _round_up(max(B, 1), 128)
    if Bp != B:
        xT = jnp.pad(xT, ((0, 0), (0, Bp - B)))
    yT = _head_pallas_T(xT, w1, b1c, w2, b2c, block_b)
    return yT[:, :B]


@functools.partial(jax.jit, static_argnames=("block_b",))
def head_model_forward(x, w1, b1c, w2, b2c, *, block_b=32768):
    """torch-compatible HeadModel forward: x (B, 10) -> (B, 10), dtype preserved.

    The two boundary transposes are full HBM relayouts of the activation tensor; for large-B
    throughput prefer head_model_forward_transposed and keep the (D, B) layout upstream.
    """
    B, _ = x.shape
    xT = jnp.transpose(x)            # no dtype upcast: stream x in its own dtype
    Bp = _round_up(max(B, 1), 128)
    if Bp != B:
        xT = jnp.pad(xT, ((0, 0), (0, Bp - B)))
    yT = _head_pallas_T(xT, w1, b1c, w2, b2c, block_b)
    return jnp.transpose(yT[:, :B])


def _reference(x, w1, b1, w2, b2):
    h = jnp.maximum(x.astype(jnp.float32) @ w1.T + b1, 0.0)
    return jnp.maximum(h @ w2.T + b2, 0.0)


if __name__ == "__main__":
    key = jax.random.PRNGKey(0)
    kx, kw1, kb1, kw2, kb2, kx2 = jax.random.split(key, 6)

    D = _D
    bound = 1.0 / (D ** 0.5)  # deterministic torch-style uniform(-1/sqrt(in), 1/sqrt(in)) init
    w1 = jax.random.uniform(kw1, (D, D), jnp.float32, -bound, bound)
    b1 = jax.random.uniform(kb1, (D,), jnp.float32, -bound, bound)
    w2 = jax.random.uniform(kw2, (D, D), jnp.float32, -bound, bound)
    b2 = jax.random.uniform(kb2, (D,), jnp.float32, -bound, bound)
    params = prepare_head_params(w1, b1, w2, b2)

    # 1) Small torch-compatible smoke test: (B, 10) -> (B, 10).
    B = 8
    x = jax.random.normal(kx, (B, D), dtype=jnp.float32)
    out = head_model_forward(x, *params)
    jax.block_until_ready(out)
    ref = _reference(x, w1, b1, w2, b2)
    assert out.shape == (B, D)
    assert jnp.allclose(out, ref, atol=1e-5, rtol=1e-5)

    # 2) Transpose-free entry point + ragged last grid tile (B2=520 -> Bp=640, TB=256, grid=3).
    B2 = 520
    x2 = jax.random.normal(kx2, (B2, D), dtype=jnp.float32)
    outT = head_model_forward_transposed(jnp.transpose(x2), *params)
    jax.block_until_ready(outT)
    ref2 = _reference(x2, w1, b1, w2, b2)
    assert outT.shape == (D, B2)
    assert jnp.allclose(jnp.transpose(outT), ref2, atol=1e-5, rtol=1e-5)

    print("KERNEL_OK")
</pallas_src>

<mosaic_0001>
module attributes {stable_mosaic.version = 11 : i64} {
  func.func @head_mlp_kernel(%arg0: i32, %arg1: memref<10x128xf32, #tpu.memory_space<vmem>>, %arg2: memref<10x10xf32, #tpu.memory_space<vmem>>, %arg3: memref<10x1xf32, #tpu.memory_space<vmem>>, %arg4: memref<10x10xf32, #tpu.memory_space<vmem>>, %arg5: memref<10x1xf32, #tpu.memory_space<vmem>>, %arg6: memref<10x128xf32, #tpu.memory_space<vmem>>) attributes {dimension_semantics = [#tpu.dimension_semantics<parallel>], iteration_bounds = array<i64: 1>, scalar_prefetch = 0 : i64, scratch_operands = 0 : i64, tpu.core_type = #tpu.core_type<tc>, window_params = [{transform_indices = @transform_0, window_bounds = array<i64: 10, 128>}, {pipeline_mode = #tpu.pipeline_mode<synchronous>, transform_indices = @transform_1, window_bounds = array<i64: 10, 10>}, {pipeline_mode = #tpu.pipeline_mode<synchronous>, transform_indices = @transform_2, window_bounds = array<i64: 10, 1>}, {pipeline_mode = #tpu.pipeline_mode<synchronous>, transform_indices = @transform_3, window_bounds = array<i64: 10, 10>}, {pipeline_mode = #tpu.pipeline_mode<synchronous>, transform_indices = @transform_4, window_bounds = array<i64: 10, 1>}, {transform_indices = @transform_5, window_bounds = array<i64: 10, 128>}]} {
    %c0 = arith.constant 0 : index
    %c0_0 = arith.constant 0 : index
    %0 = vector.load %arg1[%c0, %c0_0] : memref<10x128xf32, #tpu.memory_space<vmem>>, vector<10x128xf32>
    %c0_1 = arith.constant 0 : index
    %c0_2 = arith.constant 0 : index
    %1 = vector.load %arg2[%c0_1, %c0_2] : memref<10x10xf32, #tpu.memory_space<vmem>>, vector<10x10xf32>
    %cst = arith.constant dense<0.000000e+00> : vector<10x128xf32>
    %2 = tpu.matmul %1, %0, %cst {dimension_numbers = #tpu.dot_dimension_numbers<[1], [0], [0], [1], [0, 0, 1, 1], [], []>, precision = #tpu.contract_precision<fp32>} : vector<10x10xf32>, vector<10x128xf32>, vector<10x128xf32> -> vector<10x128xf32>
    %c0_3 = arith.constant 0 : index
    %c0_4 = arith.constant 0 : index
    %3 = vector.load %arg3[%c0_3, %c0_4] : memref<10x1xf32, #tpu.memory_space<vmem>>, vector<10x1xf32>
    %4 = vector.broadcast %3 : vector<10x1xf32> to vector<10x128xf32>
    %5 = arith.addf %2, %4 : vector<10x128xf32>
    %cst_5 = arith.constant 0.000000e+00 : f32
    %6 = vector.broadcast %cst_5 : f32 to vector<10x128xf32>
    %7 = arith.maximumf %5, %6 : vector<10x128xf32>
    %c0_6 = arith.constant 0 : index
    %c0_7 = arith.constant 0 : index
    %8 = vector.load %arg4[%c0_6, %c0_7] : memref<10x10xf32, #tpu.memory_space<vmem>>, vector<10x10xf32>
    %cst_8 = arith.constant dense<0.000000e+00> : vector<10x128xf32>
    %9 = tpu.matmul %8, %7, %cst_8 {dimension_numbers = #tpu.dot_dimension_numbers<[1], [0], [0], [1], [0, 0, 1, 1], [], []>, precision = #tpu.contract_precision<fp32>} : vector<10x10xf32>, vector<10x128xf32>, vector<10x128xf32> -> vector<10x128xf32>
    %c0_9 = arith.constant 0 : index
    %c0_10 = arith.constant 0 : index
    %10 = vector.load %arg5[%c0_9, %c0_10] : memref<10x1xf32, #tpu.memory_space<vmem>>, vector<10x1xf32>
    %11 = vector.broadcast %10 : vector<10x1xf32> to vector<10x128xf32>
    %12 = arith.addf %9, %11 : vector<10x128xf32>
    %cst_11 = arith.constant 0.000000e+00 : f32
    %13 = vector.broadcast %cst_11 : f32 to vector<10x128xf32>
    %14 = arith.maximumf %12, %13 : vector<10x128xf32>
    %c0_12 = arith.constant 0 : index
    %c0_13 = arith.constant 0 : index
    %15 = vector.load %arg6[%c0_12, %c0_13] : memref<10x128xf32, #tpu.memory_space<vmem>>, vector<10x128xf32>
    tpu.vector_store %arg6[%c0_12, %c0_13], %14 {strides = array<i32>} : memref<10x128xf32, #tpu.memory_space<vmem>>, vector<10x128xf32>,
    return
  }
  func.func @transform_0(%arg0: i32) -> (i32, i32) {
    %c0_i32 = arith.constant 0 : i32
    %c0_i32_0 = arith.constant 0 : i32
    return %c0_i32, %arg0 : i32, i32
  }
  func.func @transform_1(%arg0: i32) -> (i32, i32) {
    %c0_i32 = arith.constant 0 : i32
    %c0_i32_0 = arith.constant 0 : i32
    %c0_i32_1 = arith.constant 0 : i32
    return %c0_i32, %c0_i32_0 : i32, i32
  }
  func.func @transform_2(%arg0: i32) -> (i32, i32) {
    %c0_i32 = arith.constant 0 : i32
    %c0_i32_0 = arith.constant 0 : i32
    %c0_i32_1 = arith.constant 0 : i32
    return %c0_i32, %c0_i32_0 : i32, i32
  }
  func.func @transform_3(%arg0: i32) -> (i32, i32) {
    %c0_i32 = arith.constant 0 : i32
    %c0_i32_0 = arith.constant 0 : i32
    %c0_i32_1 = arith.constant 0 : i32
    return %c0_i32, %c0_i32_0 : i32, i32
  }
  func.func @transform_4(%arg0: i32) -> (i32, i32) {
    %c0_i32 = arith.constant 0 : i32
    %c0_i32_0 = arith.constant 0 : i32
    %c0_i32_1 = arith.constant 0 : i32
    return %c0_i32, %c0_i32_0 : i32, i32
  }
  func.func @transform_5(%arg0: i32) -> (i32, i32) {
    %c0_i32 = arith.constant 0 : i32
    %c0_i32_0 = arith.constant 0 : i32
    return %c0_i32, %arg0 : i32, i32
  }
}

</mosaic_0001>

<bundles_post_ra>
// kernel: head_model_forward.1
= control target key start
LH: loop header
LB: loop body
LE: loop exit
PB: predicated region body
PF: predicated region fallthrough
CT: control target
= control target key end

     0   :  { %vm43_vm0 = vcmask 1041408   ;;  %vm36_vm1 = vcmask 80896   ;;  %v463_v3 = vmov 0   ;;  %s536_s0 = inlined_call_operand.vmem [shape: f32[10,128], index: 0, kind: input, shape index: {}]   ;;  %s537_s1 = inlined_call_operand.vmem [shape: f32[10,10], index: 1, kind: input, shape index: {}]   ;;  %s538_s2 = inlined_call_operand.vmem [shape: f32[10,1], index: 2, kind: input, shape index: {}]   ;;  %s539_s3 = inlined_call_operand.vmem [shape: f32[10,10], index: 3, kind: input, shape index: {}]   ;;  %s540_s4 = inlined_call_operand.vmem [shape: f32[10,1], index: 4, kind: input, shape index: {}]   ;;  %s541_s5 = inlined_call_operand.vmem [shape: f32[10,128], index: 5, kind: output, shape index: {}]  }
   0x1   :  { %v21_v0 = vld [vmem:[%s536_s0 + $0x8] sm:$0x3]  ;;  %v20_v1 = vld [vmem:[%s536_s0] sm:$0xff]  ;;  %461 = vset.pattern.permute.xlu0 %v463_v3  ;;  %462 = vset.pattern.permute.xlu1 %v463_v3 }
   0x2   :  { %v22_v2 = vld [vmem:[%s537_s1] sm:$0xff]  ;;  %v45_v4 = vsel %vm43_vm0, %v21_v0, 0  ;;  %v63_v5 = vand.u32 4294901760, %v20_v1  ;;  %v25_v7 = vld [vmem:[%s538_s2 + $0x8] sm:$0x3] }
   0x3   :  { %v38_v6 = vsel %vm36_vm1, %v22_v2, 0  ;;  %v61_v8 = vand.u32 4294901760, %v45_v4  ;;  %33 = vperm.xlu0 %461, %v25_v7   ;;  %v23_v10 = vld [vmem:[%s537_s1 + $0x8] sm:$0x3]  ;;  %v24_v21 = vld [vmem:[%s538_s2] sm:$0xff] }
   0x4   :  { %v65_v9 = vand.u32 4294901760, %v38_v6  ;;  %v103_v11 = vsub.f32 %v20_v1, %v63_v5  ;;  %v41_v12 = vsel %vm36_vm1, %v23_v10, 0  ;;  %v239_v42 = vld [vmem:[%s539_s3] sm:$0xff]  ;;  %v240_v54 = vld [vmem:[%s539_s3 + $0x8] sm:$0x3] }
   0x5   :  { %v97_v13 = vsub.f32 %v45_v4, %v61_v8  ;;  %62 = vmatpush.msra.mxu0 %v61_v8  ;;  %163 = vmatpush.msra.mxu3 %v61_v8  ;;  %v73_v15 = vand.u32 4294901760, %v41_v12  ;;  %v254_v45 = vsel %vm36_vm1, %v239_v42, 0  ;;  %v257_v58 = vsel %vm36_vm1, %v240_v54, 0  ;;  %v241_v2 = vld [vmem:[%s540_s4] sm:$0xff] }
   0x6   :  { %v66_v14 = vsub.f32 %v38_v6, %v65_v9  ;;  %v104_v16 = vand.u32 4294901760, %v103_v11  ;;  %v280_v49 = vand.u32 4294901760, %v254_v45  ;;  %v288_v62 = vand.u32 4294901760, %v257_v58  ;;  %245 = vperm.xlu1 %462, %v241_v2  }
   0x7   :  { %133 = vmatpush.msra.mxu2 %v97_v13  ;;  %64 = vmatpush.msra.mxu0 %v63_v5  ;;  %v98_v18 = vand.u32 4294901760, %v97_v13  ;;  %v74_v19 = vsub.f32 %v41_v12, %v73_v15 }
   0x8   :  { %v67_v17 = vand.u32 4294901760, %v66_v14  ;;  %165 = vmatpush.msra.mxu3 %v63_v5  ;;  %v105_v20 = vsub.f32 %v103_v11, %v104_v16  ;;  %v281_v55 = vsub.f32 %v254_v45, %v280_v49 }
   0x9   :  { %136 = vmatpush.msra.mxu2 %v103_v11  ;;  %v99_v23 = vsub.f32 %v97_v13, %v98_v18  ;;  %v75_v24 = vand.u32 4294901760, %v74_v19  ;;  %196 = vmatpush.msrb.mxu0 %v98_v18 }
   0xa   :  { %v68_v22 = vsub.f32 %v66_v14, %v67_v17  ;;  %169 = vmatmul.f32.vlgmr.msra.gmra.mxu3 %v67_v17  ;;  %139 = vmatmul.f32.vlgmr.msra.gmra.mxu2 %v66_v14  ;;  %v106_v27 = vand.u32 4294901760, %v105_v20  ;;  %v282_v61 = vand.u32 4294901760, %v281_v55 }
   0xb   :  { %v100_v26 = vand.u32 4294901760, %v99_v23  ;;  %28 = vperm.xlu0 %461, %v24_v21   ;;  %200 = vmatpush.msrb.mxu0 %v104_v16  ;;  %v76_v28 = vsub.f32 %v74_v19, %v75_v24 }
   0xc   :  { %v69_v25 = vand.u32 4294901760, %v68_v22  ;;  %v283_v4 = vsub.f32 %v281_v55, %v282_v61 }
   0xd   :  { %101 = vmatpush.msra.mxu1 %v100_v26  ;;  %v77_v29 = vand.u32 4294901760, %v76_v28 }
   0xe   :  { %70 = vmatmul.f32.vlgmr.msra.gmra.mxu0 %v69_v25 }
   0xf   :  { %107 = vmatpush.msra.mxu1 %v106_v27 }
  0x10   :  { %109 = vmatmul.f32.vlgmr.msra.gmra.mxu1 %v65_v9 }
  0x11   :  { %225 = vmatpush.msrb.mxu1 %v61_v8 }
  0x12   :  { %175 = vmatmul.f32.gmra.mxu3 %v75_v24  ;;  %144 = vmatmul.f32.gmra.mxu2 %v74_v19 }
  0x13   :  { %227 = vmatpush.msrb.mxu1 %v63_v5  ;;  %v289_v5 = vsub.f32 %v257_v58, %v288_v62 }
  0x15   :  { %v290_v10 = vand.u32 4294901760, %v289_v5 }
  0x16   :  { %78 = vmatmul.f32.gmra.mxu0 %v77_v29 }
  0x17   :  { %v291_v14 = vsub.f32 %v289_v5, %v290_v10 }
  0x18   :  { %113 = vmatmul.f32.gmra.mxu1 %v73_v15 }
  0x19   :  { %v292_v19 = vand.u32 4294901760, %v291_v14 }
  0x1e   :  { %202 = vmatmul.f32.vlgmr.msrb.gmra.mxu0 %v65_v9 }
  0x20   :  { %229 = vmatmul.f32.vlgmr.msrb.gmra.mxu1 %v65_v9  ;;  %v284_v9 = vand.u32 4294901760, %v283_v4 }
  0x26   :  { %206 = vmatmul.f32.gmra.mxu0 %v73_v15 }
  0x28   :  { %233 = vmatmul.f32.gmra.mxu1 %v73_v15  ;;  %v242_v15 = vld [vmem:[%s540_s4 + $0x8] sm:$0x3] }
  0x29   :  { %250 = vperm.xlu1 %462, %v242_v15  }
  0x75   :  { %v34_v30 = vpop.permute.xlu0 %33 }
  0x78   :  { %v246_v22 = vpop.permute.xlu1 %245 }
  0x7d   :  { %v29_v32 = vpop.permute.xlu0 %28 }
  0x8b   :  { %v71_v31 = vpop.f32.mrf.mxu0 }
  0x8c   :  { %v72_v33 = vadd.f32 %v71_v31, %v29_v32 }
  0x8d   :  { %v110_v34 = vpop.f32.mrf.mxu1  ;;  %v140_v35 = vpop.f32.mrf.mxu2 }
  0x8e   :  { %v111_v36 = vadd.f32 %v110_v34, %v72_v33  ;;  %v170_v38 = vpop.f32.mrf.mxu3 }
  0x90   :  { %v141_v39 = vadd.f32 %v140_v35, %v111_v36 }
  0x92   :  { %v171_v43 = vadd.f32 %v170_v38, %v141_v39 }
  0x93   :  { %v79_v37 = vpop.f32.mrf.mxu0 }
  0x94   :  { %v80_v40 = vadd.f32 %v79_v37, %v34_v30 }
  0x95   :  { %v114_v41 = vpop.f32.mrf.mxu1  ;;  %v145_v46 = vpop.f32.mrf.mxu2 }
  0x96   :  { %v115_v44 = vadd.f32 %v114_v41, %v80_v40  ;;  %v176_v52 = vpop.f32.mrf.mxu3 }
  0x98   :  { %v146_v50 = vadd.f32 %v145_v46, %v115_v44 }
  0x9a   :  { %v177_v56 = vadd.f32 %v176_v52, %v146_v50 }
  0x9b   :  { %v203_v47 = vpop.f32.mrf.mxu0  ;;  %v251_v28 = vpop.permute.xlu1 %250 }
  0x9c   :  { %v204_v48 = vadd.f32 %v203_v47, %v171_v43 }
  0x9d   :  { %v230_v51 = vpop.f32.mrf.mxu1 }
  0x9e   :  { %v231_v53 = vadd.f32 %v230_v51, %v204_v48 }
  0xa0   :  { %v237_v57 = vmax.f32 %v231_v53, 0.0 }
  0xa2   :  { %v278_v63 = vand.u32 4294901760, %v237_v57 }
  0xa3   :  { %v207_v59 = vpop.f32.mrf.mxu0 }
  0xa4   :  { %v208_v60 = vadd.f32 %v207_v59, %v177_v56  ;;  %v318_v6 = vsub.f32 %v237_v57, %v278_v63 }
  0xa5   :  { %v234_v0 = vpop.f32.mrf.mxu1 }
  0xa6   :  { %v235_v1 = vadd.f32 %v234_v0, %v208_v60  ;;  %v319_v12 = vand.u32 4294901760, %v318_v6 }
  0xa8   :  { %v238_v3 = vmax.f32 %v235_v1, 0.0  ;;  %v320_v17 = vsub.f32 %v318_v6, %v319_v12 }
  0xaa   :  { %v260_v7 = vsel %vm43_vm0, %v238_v3, 0  ;;  %v321_v20 = vand.u32 4294901760, %v320_v17 }
  0xab   :  { %v276_v8 = vand.u32 4294901760, %v260_v7 }
  0xad   :  { %v312_v11 = vsub.f32 %v260_v7, %v276_v8  ;;  %277 = vmatpush.msrb.mxu2 %v276_v8  ;;  %378 = vmatpush.msra.mxu1 %v276_v8 }
  0xaf   :  { %279 = vmatpush.msrb.mxu2 %v278_v63  ;;  %348 = vmatpush.msra.mxu0 %v312_v11  ;;  %v313_v13 = vand.u32 4294901760, %v312_v11 }
  0xb0   :  { %380 = vmatpush.msra.mxu1 %v278_v63  ;;  %285 = vmatmul.f32.vlgmr.msrb.gmra.mxu2 %v284_v9 }
  0xb1   :  { %351 = vmatpush.msra.mxu0 %v318_v6  ;;  %411 = vmatpush.msra.mxu2 %v313_v13  ;;  %v314_v16 = vsub.f32 %v312_v11, %v313_v13 }
  0xb2   :  { %354 = vmatmul.f32.vlgmr.msra.gmra.mxu0 %v281_v55  ;;  %384 = vmatmul.f32.vlgmr.msra.gmra.mxu1 %v282_v61 }
  0xb3   :  { %415 = vmatpush.msra.mxu2 %v319_v12  ;;  %v315_v18 = vand.u32 4294901760, %v314_v16 }
  0xb5   :  { %316 = vmatpush.msrb.mxu3 %v315_v18 }
  0xb7   :  { %322 = vmatpush.msrb.mxu3 %v321_v20 }
  0xb8   :  { %293 = vmatmul.f32.gmra.mxu2 %v292_v19  ;;  %324 = vmatmul.f32.vlgmr.msrb.gmra.mxu3 %v280_v49 }
  0xb9   :  { %440 = vmatpush.msra.mxu3 %v276_v8 }
  0xba   :  { %359 = vmatmul.f32.gmra.mxu0 %v289_v5  ;;  %390 = vmatmul.f32.gmra.mxu1 %v290_v10 }
  0xbb   :  { %442 = vmatpush.msra.mxu3 %v278_v63 }
  0xc0   :  { %417 = vmatmul.f32.vlgmr.msra.gmra.mxu2 %v280_v49  ;;  %328 = vmatmul.f32.gmra.mxu3 %v288_v62 }
  0xc8   :  { %421 = vmatmul.f32.gmra.mxu2 %v288_v62  ;;  %444 = vmatmul.f32.vlgmr.msra.gmra.mxu3 %v280_v49 }
  0xd0   :  { %448 = vmatmul.f32.gmra.mxu3 %v288_v62 }
 0x12f   :  { %v355_v26 = vpop.f32.mrf.mxu0  ;;  %v385_v30 = vpop.f32.mrf.mxu1 }
 0x133   :  { %v286_v21 = vpop.f32.mrf.mxu2 }
 0x134   :  { %v287_v25 = vadd.f32 %v286_v21, %v246_v22 }
 0x137   :  { %v360_v36 = vpop.f32.mrf.mxu0  ;;  %v391_v41 = vpop.f32.mrf.mxu1 }
 0x13b   :  { %v325_v23 = vpop.f32.mrf.mxu3  ;;  %v294_v24 = vpop.f32.mrf.mxu2 }
 0x13c   :  { %v326_v27 = vadd.f32 %v325_v23, %v287_v25  ;;  %v295_v32 = vadd.f32 %v294_v24, %v251_v28 }
 0x13e   :  { %v356_v31 = vadd.f32 %v355_v26, %v326_v27 }
 0x140   :  { %v386_v34 = vadd.f32 %v385_v30, %v356_v31 }
 0x143   :  { %v329_v29 = vpop.f32.mrf.mxu3  ;;  %v418_v33 = vpop.f32.mrf.mxu2 }
 0x144   :  { %v330_v35 = vadd.f32 %v329_v29, %v295_v32  ;;  %v419_v37 = vadd.f32 %v418_v33, %v386_v34 }
 0x146   :  { %v361_v40 = vadd.f32 %v360_v36, %v330_v35 }
 0x148   :  { %v392_v44 = vadd.f32 %v391_v41, %v361_v40 }
 0x14b   :  { %v445_v38 = vpop.f32.mrf.mxu3  ;;  %v422_v43 = vpop.f32.mrf.mxu2 }
 0x14c   :  { %v446_v39 = vadd.f32 %v445_v38, %v419_v37  ;;  %v423_v45 = vadd.f32 %v422_v43, %v392_v44 }
 0x14e   :  { %v452_v42 = vmax.f32 %v446_v39, 0.0 }
 0x150   :  { %454 = vst [vmem:[%s541_s5] sm:$0xff] %v452_v42 }
 0x153   :  { %v449_v46 = vpop.f32.mrf.mxu3 }
 0x154   :  { %v450_v47 = vadd.f32 %v449_v46, %v423_v45 }
 0x156   :  { %v453_v48 = vmax.f32 %v450_v47, 0.0 }
 0x158   :  { %455 = vst [vmem:[%s541_s5 + $0x8] sm:$0x3] %v453_v48 }

</bundles_post_ra>
